<compile_context>
chip_gen: v6e
topology: v6e:2x2x1
jax: 0.10.0
libtpu: 0.0.40
codegen_flags: <defaults>
</compile_context>

<pallas_src>
import functools
import math

import jax
import jax.numpy as jnp
import numpy as np
from jax.experimental import pallas as pl
from jax.experimental.pallas import tpu as pltpu

# ----------------------------- config (module hyperparams) -----------------------------
D_MODEL = 32
NHEAD = 4
MAX_SUP = 4
D_K = D_MODEL // NHEAD
D_SUP = D_MODEL * MAX_SUP


# ----------------------------- the kernel (one batch per grid step) -----------------------------
def _attn_kernel(qt_ref, kt_ref, vt_ref, wqkv_ref, bqkv_ref, wo_ref, bo_ref, ot_ref,
                 *, seq, n_groups, d_k):
    """Fused projection + grouped attention + output projection for one batch.

    qt/kt/vt_ref : (d_in, seq)      bf16  token-transposed activations
    wqkv_ref     : (3, d_out, d_in) bf16  stacked W^T for q/k/v (interference pre-folded,
                                          columns pre-permuted on the superposition path)
    bqkv_ref     : (3, d_out, 1)    f32   stacked column biases
    wo_ref       : (d_out, d_out)   bf16  Wo^T (rows pre-permuted on the superposition path)
    bo_ref       : (d_out, 1)       f32
    ot_ref       : (d_out, seq)     f32   token-transposed output
    """
    scale = 1.0 / math.sqrt(d_k)

    def project(x_ref, i):
        # bf16 x bf16 -> f32 accumulation on the MXU; bias added in f32.
        p = jnp.dot(wqkv_ref[i], x_ref[...], preferred_element_type=jnp.float32)
        # Leading-dim split only (no data movement across lanes).
        return (p + bqkv_ref[i]).reshape(n_groups, d_k, seq)

    qh = project(qt_ref, 0)                                          # (G, d_k, S) f32
    kh = project(kt_ref, 1)
    vh = project(vt_ref, 2)

    # Only transpose in the kernel: batched swap of the two minor dims, done in f32.
    qh = jnp.transpose(qh, (0, 2, 1)).astype(jnp.bfloat16)           # (G, S, d_k)
    kh = kh.astype(jnp.bfloat16)                                     # (G, d_k, S)
    vh = vh.astype(jnp.bfloat16)                                     # (G, d_k, S)

    # Batched scores over all (head, superposition-dim) groups in a single dot_general.
    s = jnp.einsum("gqd,gdk->gqk", qh, kh,
                   preferred_element_type=jnp.float32) * scale       # (G, S, S) f32
    s = s - jnp.max(s, axis=-1, keepdims=True)
    e = jnp.exp(s)
    w = e * pl.reciprocal(jnp.sum(e, axis=-1, keepdims=True), approx=True)  # dropout = identity

    # Batched attention-weighted values; result comes out directly feature-major.
    ho = jnp.einsum("gdk,gqk->gdq", vh, w.astype(jnp.bfloat16),
                    preferred_element_type=jnp.float32)              # (G, d_k, S) f32

    # ONE output projection per batch instead of an accumulate chain of tiny matmuls.
    slab = ho.reshape(n_groups * d_k, seq).astype(jnp.bfloat16)      # (d_out, S), merge only
    out = jnp.dot(wo_ref[...], slab, preferred_element_type=jnp.float32) + bo_ref[...]
    ot_ref[...] = out.astype(ot_ref.dtype)


def _run_attention(qt, kt, vt, wqkv_t, b_qkv, wo_t, bo, *, seq, n_groups, d_k):
    batch, d_in, _ = qt.shape
    d_out = n_groups * d_k
    vmem = pltpu.MemorySpace.VMEM

    act_spec = pl.BlockSpec((None, d_in, seq), lambda b: (b, 0, 0), memory_space=vmem)
    out_spec = pl.BlockSpec((None, d_out, seq), lambda b: (b, 0, 0), memory_space=vmem)

    def const(shape):  # weights: same block every grid step (stay resident in VMEM)
        return pl.BlockSpec(shape, lambda b: (0,) * len(shape), memory_space=vmem)

    kernel = functools.partial(_attn_kernel, seq=seq, n_groups=n_groups, d_k=d_k)
    # NOTE: at larger seq, add a second grid axis tiling seq (512-1024 rows) and keep the
    # weight specs constant -- this layout already keeps tokens on the lane axis so it stays
    # lane-dense as seq grows.
    return pl.pallas_call(
        kernel,
        grid=(batch,),
        in_specs=[act_spec, act_spec, act_spec,
                  const((3, d_out, d_in)), const((3, d_out, 1)),
                  const((d_out, d_out)), const((d_out, 1))],
        out_specs=out_spec,
        out_shape=jax.ShapeDtypeStruct((batch, d_out, seq), jnp.float32),
        compiler_params=pltpu.CompilerParams(dimension_semantics=("parallel",)),
    )(qt, kt, vt, wqkv_t, b_qkv, wo_t, bo)


# ----------------------------- deterministic path -----------------------------
def pallas_deterministic_attention(q, k, v, p):
    B, S, D = q.shape
    assert D == NHEAD * D_K

    def to_t(x):  # (B, S, D) -> (B, D, S), bf16 for the MXU
        return jnp.swapaxes(x, 1, 2).astype(jnp.bfloat16)

    wqkv_t = jnp.stack([p["wq"].T, p["wk"].T, p["wv"].T]).astype(jnp.bfloat16)  # (3, D, D)
    b_qkv = jnp.stack([p["bq"].T, p["bk"].T, p["bv"].T])                        # (3, D, 1) f32
    out_t = _run_attention(to_t(q), to_t(k), to_t(v), wqkv_t, b_qkv,
                           p["wo"].T.astype(jnp.bfloat16), p["bo"].T,
                           seq=S, n_groups=NHEAD, d_k=D_K)
    return jnp.swapaxes(out_t, 1, 2)                                            # (B, S, D) f32


# ----------------------------- superposition path -----------------------------
def _superposition_perm():
    # new column n = m*d_model + (h*d_k + d) comes from original column (h*d_k + d)*M + m
    # (PyTorch view(B, S, H, d_k, M) flattening) -> contiguous (m, h) groups of d_k features.
    idx = np.arange(D_SUP)
    m = idx // D_MODEL
    r = idx % D_MODEL
    return r * MAX_SUP + m


def _interference_fold_matrix(interference, amp):
    """T (D_SUP, D_SUP) so that applying quantum interference to x = inp @ W + b equals
    inp @ (W @ T) + b @ T.  Interference is a per-(head, feature) linear mix along the
    superposition axis with matrix I + 0.1*amp*F[h]."""
    mix = (jnp.eye(MAX_SUP, dtype=jnp.float32)[None, :, :]
           + 0.1 * amp.reshape(()) * interference)                  # (H, M, M)
    mix_r = jnp.repeat(mix, D_K, axis=0)                            # (D_MODEL, M, M)
    T = jnp.einsum("rij,rs->risj", mix_r, jnp.eye(D_MODEL, dtype=jnp.float32))
    return T.reshape(D_SUP, D_SUP)


def pallas_superposition_attention(q, k, v, p):
    B, S, DS = q.shape
    assert DS == D_SUP
    perm = _superposition_perm()
    T = _interference_fold_matrix(p["interference"].astype(jnp.float32),
                                  p["amp"].astype(jnp.float32))

    def fold(w, b):
        # fold interference into the projection, then permute output features so each
        # (superposition-dim, head) group is a contiguous d_k block
        return (w @ T)[:, perm], (b @ T)[:, perm]

    wq, bq = fold(p["s_wq"], p["s_bq"])
    wk, bk = fold(p["s_wk"], p["s_bk"])
    wv, bv = fold(p["s_wv"], p["s_bv"])
    wqkv_t = jnp.stack([wq.T, wk.T, wv.T]).astype(jnp.bfloat16)      # (3, DS, DS)
    b_qkv = jnp.stack([bq.T, bk.T, bv.T])                            # (3, DS, 1) f32
    wo_t = p["s_wo"][perm, :].T.astype(jnp.bfloat16)                 # rows permuted to match slab

    def to_t(x):
        return jnp.swapaxes(x, 1, 2).astype(jnp.bfloat16)

    out_t = _run_attention(to_t(q), to_t(k), to_t(v), wqkv_t, b_qkv, wo_t, p["s_bo"].T,
                           seq=S, n_groups=NHEAD * MAX_SUP, d_k=D_K)
    return jnp.swapaxes(out_t, 1, 2)                                 # (B, S, DS) f32


# ----------------------------- module-level forward -----------------------------
@functools.partial(jax.jit, static_argnames=("is_superposition",))
def quantum_inspired_attention_forward(q, k, v, params, is_superposition=False):
    # attn_mask / key_padding_mask default to None in the reference forward.
    if is_superposition:
        return pallas_superposition_attention(q, k, v, params)
    return pallas_deterministic_attention(q, k, v, params)


# ----------------------------- parameters (deterministic init) -----------------------------
def init_params(key):
    def lin(k, din, dout):
        kw, kb = jax.random.split(k)
        w = jax.random.normal(kw, (din, dout), jnp.float32) * (1.0 / math.sqrt(din))
        b = jax.random.normal(kb, (1, dout), jnp.float32) * 0.01
        return w, b

    keys = jax.random.split(key, 9)
    p = {}
    p["wq"], p["bq"] = lin(keys[0], D_MODEL, D_MODEL)
    p["wk"], p["bk"] = lin(keys[1], D_MODEL, D_MODEL)
    p["wv"], p["bv"] = lin(keys[2], D_MODEL, D_MODEL)
    p["wo"], p["bo"] = lin(keys[3], D_MODEL, D_MODEL)
    p["s_wq"], p["s_bq"] = lin(keys[4], D_SUP, D_SUP)
    p["s_wk"], p["s_bk"] = lin(keys[5], D_SUP, D_SUP)
    p["s_wv"], p["s_bv"] = lin(keys[6], D_SUP, D_SUP)
    p["s_wo"], p["s_bo"] = lin(keys[7], D_SUP, D_SUP)
    p["interference"] = jax.random.normal(keys[8], (NHEAD, MAX_SUP, MAX_SUP), jnp.float32)
    p["amp"] = jnp.ones((1,), jnp.float32)
    # TODO(synk): sparsity_gate / superposition_sparsity_gate params omitted -- the default
    # forward never calls them and that path needs torch.quantile.
    return p


# ----------------------------- pure-JAX f32 references (for verification) -----------------------------
def det_ref(q, k, v, p):
    B, S, D = q.shape
    qp = (q @ p["wq"] + p["bq"]).reshape(B, S, NHEAD, D_K).transpose(0, 2, 1, 3)
    kp = (k @ p["wk"] + p["bk"]).reshape(B, S, NHEAD, D_K).transpose(0, 2, 1, 3)
    vp = (v @ p["wv"] + p["bv"]).reshape(B, S, NHEAD, D_K).transpose(0, 2, 1, 3)
    s = jnp.einsum("bhqd,bhkd->bhqk", qp, kp) / math.sqrt(D_K)
    w = jax.nn.softmax(s, axis=-1)
    o = jnp.einsum("bhqk,bhkd->bhqd", w, vp)
    o = o.transpose(0, 2, 1, 3).reshape(B, S, D)
    return o @ p["wo"] + p["bo"]


def sup_ref(q, k, v, p):
    B, S, DM = q.shape

    def tf(x):
        return x.reshape(B, S, NHEAD, D_K, MAX_SUP).transpose(0, 2, 1, 3, 4)

    qp = tf(q @ p["s_wq"] + p["s_bq"])
    kp = tf(k @ p["s_wk"] + p["s_bk"])
    vp = tf(v @ p["s_wv"] + p["s_bv"])
    amp = p["amp"][0]
    F = p["interference"]

    def intf(x):
        return x + 0.1 * amp * jnp.einsum("bhsdi,hij->bhsdj", x, F)

    qp, kp, vp = intf(qp), intf(kp), intf(vp)
    outs = []
    for m in range(MAX_SUP):
        s = jnp.einsum("bhqd,bhkd->bhqk", qp[..., m], kp[..., m]) / math.sqrt(D_K)
        w = jax.nn.softmax(s, axis=-1)
        outs.append(jnp.einsum("bhqk,bhkd->bhqd", w, vp[..., m])[..., None])
    o = jnp.concatenate(outs, axis=-1)                       # (B, H, S, d_k, M)
    o = o.transpose(0, 2, 1, 3, 4).reshape(B, S, DM)
    return o @ p["s_wo"] + p["s_bo"]


# ----------------------------- main -----------------------------
if __name__ == "__main__":
    key = jax.random.PRNGKey(0)
    pkey, k1, k2, k3, k4, k5, k6 = jax.random.split(key, 7)
    params = init_params(pkey)

    B, S = 2, 8
    q = jax.random.normal(k1, (B, S, D_MODEL), jnp.float32)
    k = jax.random.normal(k2, (B, S, D_MODEL), jnp.float32)
    v = jax.random.normal(k3, (B, S, D_MODEL), jnp.float32)

    out_det = quantum_inspired_attention_forward(q, k, v, params, is_superposition=False)
    jax.block_until_ready(out_det)

    qs = jax.random.normal(k4, (B, S, D_SUP), jnp.float32)
    ks = jax.random.normal(k5, (B, S, D_SUP), jnp.float32)
    vs = jax.random.normal(k6, (B, S, D_SUP), jnp.float32)

    out_sup = quantum_inspired_attention_forward(qs, ks, vs, params, is_superposition=True)
    jax.block_until_ready(out_sup)

    # Kernel runs bf16 on the MXU (f32 accumulation) vs f32 reference -> loosened tolerance.
    np.testing.assert_allclose(np.asarray(out_det), np.asarray(det_ref(q, k, v, params)),
                               rtol=1e-1, atol=1e-1)
    np.testing.assert_allclose(np.asarray(out_sup), np.asarray(sup_ref(qs, ks, vs, params)),
                               rtol=1e-1, atol=1e-1)

    print("KERNEL_OK")
</pallas_src>

<mosaic_0001>
module attributes {stable_mosaic.version = 11 : i64} {
  func.func @_attn_kernel(%arg0: i32, %arg1: memref<1x32x8xbf16, #tpu.memory_space<vmem>>, %arg2: memref<1x32x8xbf16, #tpu.memory_space<vmem>>, %arg3: memref<1x32x8xbf16, #tpu.memory_space<vmem>>, %arg4: memref<3x32x32xbf16, #tpu.memory_space<vmem>>, %arg5: memref<3x32x1xf32, #tpu.memory_space<vmem>>, %arg6: memref<32x32xbf16, #tpu.memory_space<vmem>>, %arg7: memref<32x1xf32, #tpu.memory_space<vmem>>, %arg8: memref<1x32x8xf32, #tpu.memory_space<vmem>>) attributes {dimension_semantics = [#tpu.dimension_semantics<parallel>], iteration_bounds = array<i64: 2>, scalar_prefetch = 0 : i64, scratch_operands = 0 : i64, tpu.core_type = #tpu.core_type<tc>, window_params = [{transform_indices = @transform_0, window_bounds = array<i64: 1, 32, 8>}, {transform_indices = @transform_1, window_bounds = array<i64: 1, 32, 8>}, {transform_indices = @transform_2, window_bounds = array<i64: 1, 32, 8>}, {pipeline_mode = #tpu.pipeline_mode<synchronous>, transform_indices = @transform_3, window_bounds = array<i64: 3, 32, 32>}, {pipeline_mode = #tpu.pipeline_mode<synchronous>, transform_indices = @transform_4, window_bounds = array<i64: 3, 32, 1>}, {pipeline_mode = #tpu.pipeline_mode<synchronous>, transform_indices = @transform_5, window_bounds = array<i64: 32, 32>}, {pipeline_mode = #tpu.pipeline_mode<synchronous>, transform_indices = @transform_6, window_bounds = array<i64: 32, 1>}, {transform_indices = @transform_7, window_bounds = array<i64: 1, 32, 8>}]} {
    %c0 = arith.constant 0 : index
    %c0_0 = arith.constant 0 : index
    %c0_1 = arith.constant 0 : index
    %0 = vector.load %arg4[%c0, %c0_0, %c0_1] : memref<3x32x32xbf16, #tpu.memory_space<vmem>>, vector<1x32x32xbf16>
    %1 = vector.shape_cast %0 : vector<1x32x32xbf16> to vector<32x32xbf16>
    %c0_2 = arith.constant 0 : index
    %c0_3 = arith.constant 0 : index
    %c0_4 = arith.constant 0 : index
    %2 = vector.load %arg1[%c0_2, %c0_3, %c0_4] : memref<1x32x8xbf16, #tpu.memory_space<vmem>>, vector<1x32x8xbf16>
    %3 = vector.shape_cast %2 : vector<1x32x8xbf16> to vector<32x8xbf16>
    %cst = arith.constant dense<0.000000e+00> : vector<32x8xf32>
    %4 = tpu.matmul %1, %3, %cst {dimension_numbers = #tpu.dot_dimension_numbers<[1], [0], [0], [1], [0, 0, 1, 1], [], []>} : vector<32x32xbf16>, vector<32x8xbf16>, vector<32x8xf32> -> vector<32x8xf32>
    %c0_5 = arith.constant 0 : index
    %c0_6 = arith.constant 0 : index
    %c0_7 = arith.constant 0 : index
    %5 = vector.load %arg5[%c0_5, %c0_6, %c0_7] : memref<3x32x1xf32, #tpu.memory_space<vmem>>, vector<1x32x1xf32>
    %6 = vector.shape_cast %5 : vector<1x32x1xf32> to vector<32x1xf32>
    %7 = vector.broadcast %6 : vector<32x1xf32> to vector<32x8xf32>
    %8 = arith.addf %4, %7 : vector<32x8xf32>
    %9 = vector.shape_cast %8 : vector<32x8xf32> to vector<4x8x8xf32>
    %c1 = arith.constant 1 : index
    %c0_8 = arith.constant 0 : index
    %c0_9 = arith.constant 0 : index
    %10 = vector.load %arg4[%c1, %c0_8, %c0_9] : memref<3x32x32xbf16, #tpu.memory_space<vmem>>, vector<1x32x32xbf16>
    %11 = vector.shape_cast %10 : vector<1x32x32xbf16> to vector<32x32xbf16>
    %c0_10 = arith.constant 0 : index
    %c0_11 = arith.constant 0 : index
    %c0_12 = arith.constant 0 : index
    %12 = vector.load %arg2[%c0_10, %c0_11, %c0_12] : memref<1x32x8xbf16, #tpu.memory_space<vmem>>, vector<1x32x8xbf16>
    %13 = vector.shape_cast %12 : vector<1x32x8xbf16> to vector<32x8xbf16>
    %cst_13 = arith.constant dense<0.000000e+00> : vector<32x8xf32>
    %14 = tpu.matmul %11, %13, %cst_13 {dimension_numbers = #tpu.dot_dimension_numbers<[1], [0], [0], [1], [0, 0, 1, 1], [], []>} : vector<32x32xbf16>, vector<32x8xbf16>, vector<32x8xf32> -> vector<32x8xf32>
    %c1_14 = arith.constant 1 : index
    %c0_15 = arith.constant 0 : index
    %c0_16 = arith.constant 0 : index
    %15 = vector.load %arg5[%c1_14, %c0_15, %c0_16] : memref<3x32x1xf32, #tpu.memory_space<vmem>>, vector<1x32x1xf32>
    %16 = vector.shape_cast %15 : vector<1x32x1xf32> to vector<32x1xf32>
    %17 = vector.broadcast %16 : vector<32x1xf32> to vector<32x8xf32>
    %18 = arith.addf %14, %17 : vector<32x8xf32>
    %19 = vector.shape_cast %18 : vector<32x8xf32> to vector<4x8x8xf32>
    %c2 = arith.constant 2 : index
    %c0_17 = arith.constant 0 : index
    %c0_18 = arith.constant 0 : index
    %20 = vector.load %arg4[%c2, %c0_17, %c0_18] : memref<3x32x32xbf16, #tpu.memory_space<vmem>>, vector<1x32x32xbf16>
    %21 = vector.shape_cast %20 : vector<1x32x32xbf16> to vector<32x32xbf16>
    %c0_19 = arith.constant 0 : index
    %c0_20 = arith.constant 0 : index
    %c0_21 = arith.constant 0 : index
    %22 = vector.load %arg3[%c0_19, %c0_20, %c0_21] : memref<1x32x8xbf16, #tpu.memory_space<vmem>>, vector<1x32x8xbf16>
    %23 = vector.shape_cast %22 : vector<1x32x8xbf16> to vector<32x8xbf16>
    %cst_22 = arith.constant dense<0.000000e+00> : vector<32x8xf32>
    %24 = tpu.matmul %21, %23, %cst_22 {dimension_numbers = #tpu.dot_dimension_numbers<[1], [0], [0], [1], [0, 0, 1, 1], [], []>} : vector<32x32xbf16>, vector<32x8xbf16>, vector<32x8xf32> -> vector<32x8xf32>
    %c2_23 = arith.constant 2 : index
    %c0_24 = arith.constant 0 : index
    %c0_25 = arith.constant 0 : index
    %25 = vector.load %arg5[%c2_23, %c0_24, %c0_25] : memref<3x32x1xf32, #tpu.memory_space<vmem>>, vector<1x32x1xf32>
    %26 = vector.shape_cast %25 : vector<1x32x1xf32> to vector<32x1xf32>
    %27 = vector.broadcast %26 : vector<32x1xf32> to vector<32x8xf32>
    %28 = arith.addf %24, %27 : vector<32x8xf32>
    %29 = vector.shape_cast %28 : vector<32x8xf32> to vector<4x8x8xf32>
    %30 = tpu.transpose %9, [0, 2, 1] : vector<4x8x8xf32> -> vector<4x8x8xf32>
    %31 = arith.truncf %30 : vector<4x8x8xf32> to vector<4x8x8xbf16>
    %32 = arith.truncf %19 : vector<4x8x8xf32> to vector<4x8x8xbf16>
    %33 = arith.truncf %29 : vector<4x8x8xf32> to vector<4x8x8xbf16>
    "tpu.trace_start"() <{level = 10 : i32, message = "gqd,gdk->gqk"}> : () -> ()
    %cst_26 = arith.constant dense<0.000000e+00> : vector<4x8x8xf32>
    %34 = tpu.matmul %31, %32, %cst_26 {dimension_numbers = #tpu.dot_dimension_numbers<[2], [1], [1], [2], [0, 0, 0, 1, 1, 2], [0], [0]>} : vector<4x8x8xbf16>, vector<4x8x8xbf16>, vector<4x8x8xf32> -> vector<4x8x8xf32>
    "tpu.trace_stop"() : () -> ()
    %cst_27 = arith.constant 0.353553385 : f32
    %35 = vector.broadcast %cst_27 : f32 to vector<4x8x8xf32>
    %36 = arith.mulf %34, %35 : vector<4x8x8xf32>
    %cst_28 = arith.constant dense<0xFF800000> : vector<4x8xf32>
    %37 = vector.multi_reduction <maximumf>, %36, %cst_28 [2] : vector<4x8x8xf32> to vector<4x8xf32>
    %38 = vector.shape_cast %37 : vector<4x8xf32> to vector<4x8x1xf32>
    %39 = vector.broadcast %38 : vector<4x8x1xf32> to vector<4x8x8xf32>
    %40 = arith.subf %36, %39 : vector<4x8x8xf32>
    %41 = math.exp %40 : vector<4x8x8xf32>
    %cst_29 = arith.constant dense<0.000000e+00> : vector<4x8xf32>
    %42 = vector.multi_reduction <add>, %41, %cst_29 [2] : vector<4x8x8xf32> to vector<4x8xf32>
    %43 = vector.shape_cast %42 : vector<4x8xf32> to vector<4x8x1xf32>
    %44 = tpu.reciprocal %43 {approx = true} : vector<4x8x1xf32> -> vector<4x8x1xf32>
    %45 = vector.broadcast %44 : vector<4x8x1xf32> to vector<4x8x8xf32>
    %46 = arith.mulf %41, %45 : vector<4x8x8xf32>
    %47 = arith.truncf %46 : vector<4x8x8xf32> to vector<4x8x8xbf16>
    "tpu.trace_start"() <{level = 10 : i32, message = "gdk,gqk->gdq"}> : () -> ()
    %cst_30 = arith.constant dense<0.000000e+00> : vector<4x8x8xf32>
    %48 = tpu.matmul %33, %47, %cst_30 {dimension_numbers = #tpu.dot_dimension_numbers<[2], [2], [1], [1], [0, 0, 0, 1, 1, 1], [0], [0]>} : vector<4x8x8xbf16>, vector<4x8x8xbf16>, vector<4x8x8xf32> -> vector<4x8x8xf32>
    "tpu.trace_stop"() : () -> ()
    %49 = vector.shape_cast %48 : vector<4x8x8xf32> to vector<32x8xf32>
    %50 = arith.truncf %49 : vector<32x8xf32> to vector<32x8xbf16>
    %c0_31 = arith.constant 0 : index
    %c0_32 = arith.constant 0 : index
    %51 = vector.load %arg6[%c0_31, %c0_32] : memref<32x32xbf16, #tpu.memory_space<vmem>>, vector<32x32xbf16>
    %cst_33 = arith.constant dense<0.000000e+00> : vector<32x8xf32>
    %52 = tpu.matmul %51, %50, %cst_33 {dimension_numbers = #tpu.dot_dimension_numbers<[1], [0], [0], [1], [0, 0, 1, 1], [], []>} : vector<32x32xbf16>, vector<32x8xbf16>, vector<32x8xf32> -> vector<32x8xf32>
    %c0_34 = arith.constant 0 : index
    %c0_35 = arith.constant 0 : index
    %53 = vector.load %arg7[%c0_34, %c0_35] : memref<32x1xf32, #tpu.memory_space<vmem>>, vector<32x1xf32>
    %54 = vector.broadcast %53 : vector<32x1xf32> to vector<32x8xf32>
    %55 = arith.addf %52, %54 : vector<32x8xf32>
    %c0_36 = arith.constant 0 : index
    %c0_37 = arith.constant 0 : index
    %c0_38 = arith.constant 0 : index
    %56 = vector.load %arg8[%c0_36, %c0_37, %c0_38] : memref<1x32x8xf32, #tpu.memory_space<vmem>>, vector<1x32x8xf32>
    %57 = vector.shape_cast %56 : vector<1x32x8xf32> to vector<32x8xf32>
    %58 = vector.shape_cast %55 : vector<32x8xf32> to vector<1x32x8xf32>
    tpu.vector_store %arg8[%c0_36, %c0_37, %c0_38], %58 {strides = array<i32>} : memref<1x32x8xf32, #tpu.memory_space<vmem>>, vector<1x32x8xf32>,
    return
  }
  func.func @transform_0(%arg0: i32) -> (i32, i32, i32) {
    %c0_i32 = arith.constant 0 : i32
    %c0_i32_0 = arith.constant 0 : i32
    %c0_i32_1 = arith.constant 0 : i32
    return %arg0, %c0_i32, %c0_i32_0 : i32, i32, i32
  }
  func.func @transform_1(%arg0: i32) -> (i32, i32, i32) {
    %c0_i32 = arith.constant 0 : i32
    %c0_i32_0 = arith.constant 0 : i32
    %c0_i32_1 = arith.constant 0 : i32
    return %arg0, %c0_i32, %c0_i32_0 : i32, i32, i32
  }
  func.func @transform_2(%arg0: i32) -> (i32, i32, i32) {
    %c0_i32 = arith.constant 0 : i32
    %c0_i32_0 = arith.constant 0 : i32
    %c0_i32_1 = arith.constant 0 : i32
    return %arg0, %c0_i32, %c0_i32_0 : i32, i32, i32
  }
  func.func @transform_3(%arg0: i32) -> (i32, i32, i32) {
    %c0_i32 = arith.constant 0 : i32
    %c0_i32_0 = arith.constant 0 : i32
    %c0_i32_1 = arith.constant 0 : i32
    %c0_i32_2 = arith.constant 0 : i32
    return %c0_i32, %c0_i32_0, %c0_i32_1 : i32, i32, i32
  }
  func.func @transform_4(%arg0: i32) -> (i32, i32, i32) {
    %c0_i32 = arith.constant 0 : i32
    %c0_i32_0 = arith.constant 0 : i32
    %c0_i32_1 = arith.constant 0 : i32
    %c0_i32_2 = arith.constant 0 : i32
    return %c0_i32, %c0_i32_0, %c0_i32_1 : i32, i32, i32
  }
  func.func @transform_5(%arg0: i32) -> (i32, i32) {
    %c0_i32 = arith.constant 0 : i32
    %c0_i32_0 = arith.constant 0 : i32
    %c0_i32_1 = arith.constant 0 : i32
    return %c0_i32, %c0_i32_0 : i32, i32
  }
  func.func @transform_6(%arg0: i32) -> (i32, i32) {
    %c0_i32 = arith.constant 0 : i32
    %c0_i32_0 = arith.constant 0 : i32
    %c0_i32_1 = arith.constant 0 : i32
    return %c0_i32, %c0_i32_0 : i32, i32
  }
  func.func @transform_7(%arg0: i32) -> (i32, i32, i32) {
    %c0_i32 = arith.constant 0 : i32
    %c0_i32_0 = arith.constant 0 : i32
    %c0_i32_1 = arith.constant 0 : i32
    return %arg0, %c0_i32, %c0_i32_0 : i32, i32, i32
  }
}

</mosaic_0001>

<bundles_post_ra>
// kernel: quantum_inspired_attention_forward.1
= control target key start
LH: loop header
LB: loop body
LE: loop exit
PB: predicated region body
PF: predicated region fallthrough
CT: control target
= control target key end

     0   :  { %s1677_s24 = smov 0   ;;  %s1853_s0 = inlined_call_operand.vmem [shape: bf16[2,32,8], index: 0, kind: input, shape index: {}]   ;;  %s1854_s1 = inlined_call_operand.vmem [shape: bf16[2,32,8], index: 1, kind: input, shape index: {}]   ;;  %s1855_s2 = inlined_call_operand.vmem [shape: bf16[2,32,8], index: 2, kind: input, shape index: {}]   ;;  %s1856_s3 = inlined_call_operand.vmem [shape: bf16[3,32,32], index: 3, kind: input, shape index: {}]   ;;  %s1857_s4 = inlined_call_operand.vmem [shape: f32[3,32,1], index: 4, kind: input, shape index: {}]   ;;  %s1858_s5 = inlined_call_operand.vmem [shape: bf16[32,32], index: 5, kind: input, shape index: {}]   ;;  %s1859_s6 = inlined_call_operand.vmem [shape: f32[32,1], index: 6, kind: input, shape index: {}]   ;;  %s1860_s7 = inlined_call_operand.vmem [shape: f32[2,32,8], index: 7, kind: output, shape index: {}]  }
   0x1 LB: > { %s1392_s25 = sadd.s32 4294967295, %s1632_s24   ;;  %p1396_p0 = scmp.ge.s32.totalorder %s1632_s24, 1  ;;  %s1632_s24 = sphi %s1677_s24, %s17_s24  }
   0x2   : > { %p257_p1 = scmp.lt.s32.totalorder %s1632_s24, 3 }
   0x4   : > { %p258_p2 = pnand %p1396_p0, %p257_p1 }
   0x5   : > { %p299_p3 = scmp.lt.s32.totalorder (!%p258_p2), %s1392_s25, 1 }
   0x6   : > { %261 = sbr.rel (%p258_p2) target bundleno = 1289 (0x509), region = 48 }
   0xb   : > { %v1600_v0 = vld [vmem:[%s1856_s3] sm:$0xff]   ;;  %vm374_vm0 = vcmask 261120   ;;  %v1601_v1 = vld [vmem:[%s1856_s3 + $0x10] sm:$0xff]   ;;  %s1862_s25 = smov (!%p299_p3, %s1392_s25), 1  ;;  %v1634_v2 = vmov 0   ;;  %v329_v6 = vld [vmem:[%s1857_s4 + $0x8] sm:$0xff] }
   0xc   : > { %1493 = vmatprep.mubr.msk.bf16.mxu0 %vm374_vm0, %v1600_v0  ;;  %1501 = vmatprep.mubr.msk.bf16.mxu1 %vm374_vm0, %v1601_v1  ;;  %s1696_s30 = sshll.u32 %s1862_s25, 4  ;;  %v328_v3 = vld [vmem:[%s1857_s4] sm:$0xff]  ;;  %v330_v4 = vld [vmem:[%s1857_s4 + $0x10] sm:$0xff]  ;;  %v331_v8 = vld [vmem:[%s1857_s4 + $0x18] sm:$0xff]  ;;  %v1635_v18 = vmov 0.0   ;;  %vm796_vm1 = vcmask 1043456  }
   0xd   : > { %1580 = vset.pattern.permute.xlu0 %v1634_v2  ;;  %1581 = vset.pattern.permute.xlu1 %v1634_v2  ;;  %s303_s14 = scalar_lea.vmem %s1853_s0, %s1696_s30  ;;  %s308_s17 = scalar_lea.vmem %s1854_s1, %s1696_s30  ;;  %v1602_v11 = vld [vmem:[%s1856_s3 + $0x8] sm:$0xff]   ;;  %v1415_v12 = vld [vmem:[%s1857_s4 + $0x20] sm:$0xff]  ;;  %v1603_v13 = vld [vmem:[%s1856_s3 + $0x18] sm:$0xff]   ;;  %vm1636_vm2 = vmmov 0   ;;  %vm792_vm3 = vcmask 64512  }
   0xe   : > { %334 = vperm.xlu0 %1580, %v328_v3   ;;  %344 = vperm.xlu1 %1581, %v330_v4   ;;  %v1596_v5 = vld [vmem:[%s303_s14 + $0x8] sm:$0xff]   ;;  %v1598_v9 = vld [vmem:[%s303_s14] sm:$0xff]   ;;  %v1417_v15 = vld [vmem:[%s1857_s4 + $0x30] sm:$0xff]  ;;  %s313_s16 = scalar_lea.vmem %s1855_s2, %s1696_s30  ;;  %s1456_s20 = sshll.u32 %s1862_s25, 5 }
   0xf   : > { %v1597_v7 = vld [vmem:[%s308_s17 + $0x8] sm:$0xff]   ;;  %1489 = vmatprep.subr.bf16.mxu0 %v1596_v5  ;;  %v1599_v10 = vld [vmem:[%s308_s17] sm:$0xff]   ;;  %v1418_v16 = vld [vmem:[%s1857_s4 + $0x38] sm:$0xff]  ;;  %s318_s22 = scalar_lea.vmem %s1860_s7, %s1456_s20 }
  0x10   : > { %1497 = vmatprep.subr.bf16.mxu1 %v1597_v7  ;;  %1490 = vmatpush3.bf16.msra.mxu0 %v1596_v5  ;;  %v1416_v14 = vld [vmem:[%s1857_s4 + $0x28] sm:$0xff]  ;;  %v1605_v19 = vld [vmem:[%s313_s16] sm:$0xff]  }
  0x11   : > { %1498 = vmatpush3.bf16.msra.mxu1 %v1597_v7  ;;  %1491 = vmatprep.subr.bf16.mxu0 %v1598_v9  ;;  %v1604_v17 = vld [vmem:[%s313_s16 + $0x8] sm:$0xff]   ;;  %v1606_v20 = vld [vmem:[%s1856_s3 + $0x20] sm:$0xff]  }
  0x12   : > { %1499 = vmatprep.subr.bf16.mxu1 %v1599_v10  ;;  %339 = vperm.xlu0 %1580, %v329_v6   ;;  %v1607_v21 = vld [vmem:[%s1856_s3 + $0x28] sm:$0xff]  }
  0x13   : > { %349 = vperm.xlu1 %1581, %v331_v8  }
  0x14   : > { %1492 = vmatpush3.bf16.msra.mxu0 %v1598_v9 }
  0x15   : > { %1500 = vmatpush3.bf16.msra.mxu1 %v1599_v10  ;;  %1505 = vmatprep.subr.bf16.mxu0 %v1604_v17 }
  0x16   : > { %446 = vperm.xlu0 %1580, %v1415_v12   ;;  %1513 = vmatprep.subr.bf16.mxu1 %v1635_v18 }
  0x17   : > { %1494 = vmatmul.mubr.msk.bf16.vlgmr.msra.gmra.mxu0 %vm374_vm0, %v1602_v11  ;;  %451 = vperm.xlu1 %1581, %v1416_v14  }
  0x18   : > { %1502 = vmatmul.mubr.msk.bf16.vlgmr.msra.gmra.mxu1 %vm374_vm0, %v1603_v13  ;;  %1506 = vmatpush3.bf16.msra.mxu0 %v1604_v17 }
  0x19   : > { %1507 = vmatprep.subr.bf16.mxu0 %v1605_v19  ;;  %1509 = vmatprep.mubr.msk.bf16.mxu0 %vm374_vm0, %v1606_v20 }
  0x1a   : > { %456 = vperm.xlu0 %1580, %v1417_v15   ;;  %1515 = vmatprep.mubr.msk.bf16.mxu1 %vm1636_vm2, %v1635_v18 }
  0x1b   : > { %461 = vperm.xlu1 %1581, %v1418_v16  }
  0x1c   : > { %1508 = vmatpush3.bf16.msra.mxu0 %v1605_v19 }
  0x1d   : > { %1519 = vmatprep.subr.bf16.mxu0 %v1635_v18 }
  0x1f   : > { %1510 = vmatmul.mubr.msk.bf16.vlgmr.msra.gmra.mxu0 %vm374_vm0, %v1607_v21 }
  0x20   : > { %1521 = vmatprep.mubr.msk.bf16.mxu0 %vm1636_vm2, %v1635_v18 }
  0x89   : > { %v335_v22 = vpop.permute.xlu0 %334  ;;  %v345_v23 = vpop.permute.xlu1 %344 }
  0x8d   : > { %v340_v24 = vpop.permute.xlu0 %339 }
  0x8e   : > { %v350_v25 = vpop.permute.xlu1 %349 }
  0x91   : > { %v447_v26 = vpop.permute.xlu0 %446 }
  0x92   : > { %v452_v27 = vpop.permute.xlu1 %451 }
  0x95   : > { %v457_v28 = vpop.permute.xlu0 %456 }
  0x96   : > { %v462_v34 = vpop.permute.xlu1 %461 }
  0xd7   : > { %v1495_v29 = vpop.f32.mrf.mxu0 }
  0xd8   : > { %v1503_v30 = vpop.f32.mrf.mxu1  ;;  %v424_v38 = vadd.f32 %v1495_v29, %v345_v23 }
  0xd9   : > { %v535_v31 = vadd.f32 %v1503_v30, %v457_v28  ;;  %v415_v32 = vpop.f32.mrf.mxu0 }
  0xda   : > { %v526_v33 = vpop.f32.mrf.mxu1  ;;  %v416_v45 = vadd.f32 %v415_v32, %v335_v22 }
  0xdb   : > { %v786_v35 = vpack.c.bf16 %v535_v31, %v535_v31  ;;  %v527_v36 = vadd.f32 %v526_v33, %v447_v26  ;;  %v1496_v37 = vpop.f32.mrf.mxu0  ;;  %v1429_v31 = vld [vmem:[%s1857_s4 + $0x40] sm:$0xff] }
  0xdc   : > { %v427_v39 = vadd.f32 %v1496_v37, %v350_v25  ;;  %v1504_v40 = vpop.f32.mrf.mxu1 }
  0xdd   : > { %v890_v41 = vsel %vm796_vm1, %v786_v35, 0  ;;  %v784_v42 = vpack.c.bf16 %v527_v36, %v527_v36  ;;  %v418_v43 = vpop.f32.mrf.mxu0  ;;  %v538_v44 = vadd.f32 %v1504_v40, %v462_v34 }
  0xde   : > { %v1589_v46 = vpack.i.bf16 %v427_v39, %v424_v38  ;;  %v419_v47 = vadd.f32 %v418_v43, %v340_v24  ;;  %v529_v48 = vpop.f32.mrf.mxu1 }
  0xdf   : > { %v798_v49 = vsel %vm796_vm1, %v784_v42, 0  ;;  %v787_v50 = vpack.c.bf16 %v538_v44, %v538_v44  ;;  %v530_v51 = vadd.f32 %v529_v48, %v452_v27  ;;  %v1776_v2 = vpop.f32.mrf.mxu0 }
  0xe0   : > { %v1582_v52 = vpack.i.bf16 %v419_v47, %v416_v45  ;;  %1514 = vmatpush3.bf16.msra.mxu1 %v798_v49  ;;  %1590 = vxpose.xlu1.b32.start.end [1/1] (short) (narrow) %v1589_v46, 8 }
  0xe1   : > { %v936_v53 = vsel %vm796_vm1, %v787_v50, 0  ;;  %v785_v54 = vpack.c.bf16 %v530_v51, %v530_v51  ;;  %1525 = vmatprep.subr.bf16.mxu1 %v1635_v18  ;;  %v1778_v3 = vpop.f32.mrf.mxu0 }
  0xe2   : > { %1583 = vxpose.xlu0.b32.start.end [1/1] (short) (narrow) %v1582_v52, 8  ;;  %v1431_v52 = vld [vmem:[%s1857_s4 + $0x50] sm:$0xff] }
  0xe3   : > { %v844_v55 = vsel %vm796_vm1, %v785_v54, 0  ;;  %v1780_v4 = vpop.f32.mrf.mxu0  ;;  %v1221_v54 = vld [vmem:[%s1859_s6 + $0x8] sm:$0xff] }
  0xe4   : > { %1520 = vmatpush3.bf16.msra.mxu0 %v844_v55  ;;  %v1430_v55 = vld [vmem:[%s1857_s4 + $0x48] sm:$0xff] }
  0xe5   : > { %1531 = vmatprep.subr.bf16.mxu0 %v1635_v18  ;;  %v1782_v5 = vpop.f32.mrf.mxu0 }
 0x15c   : > { %v1591_v56 = vpop.trf.xlu1 }
 0x15d   : > { %v1595_v62 = vunpack.i.h.bf16 %v1591_v56  ;;  %v1592_v63 = vunpack.i.l.bf16 %v1591_v56  ;;  %v1223_v56 = vld [vmem:[%s1859_s6 + $0x18] sm:$0xff] }
 0x15e   : > { %v1584_v57 = vpop.trf.xlu0 }
 0x15f   : > { %v1588_v58 = vunpack.i.h.bf16 %v1584_v57  ;;  %v1585_v59 = vunpack.i.l.bf16 %v1584_v57  ;;  %v783_v0 = vpack.c.bf16 %v1595_v62, %v1595_v62  ;;  %v782_v1 = vpack.c.bf16 %v1592_v63, %v1592_v63  ;;  %v1220_v57 = vld [vmem:[%s1859_s6] sm:$0xff] }
 0x161   : > { %v781_v60 = vpack.c.bf16 %v1588_v58, %v1588_v58  ;;  %v780_v61 = vpack.c.bf16 %v1585_v59, %v1585_v59  ;;  %v1222_v58 = vld [vmem:[%s1859_s6 + $0x10] sm:$0xff] }
 0x163   : > { %1516 = vmatmul.mubr.msk.bf16.vlgmr.msra.gmra.mxu1 %vm792_vm3, %v780_v61  ;;  %1522 = vmatmul.mubr.msk.bf16.vlgmr.msra.gmra.mxu0 %vm792_vm3, %v781_v60 }
 0x164   : > { %1526 = vmatpush3.bf16.msra.mxu1 %v890_v41  ;;  %1532 = vmatpush3.bf16.msra.mxu0 %v936_v53  ;;  %v1432_v53 = vld [vmem:[%s1857_s4 + $0x58] sm:$0xff] }
 0x165   : > { %1527 = vmatprep.mubr.msk.bf16.mxu1 %vm1636_vm2, %v1635_v18  ;;  %1533 = vmatprep.mubr.msk.bf16.mxu0 %vm1636_vm2, %v1635_v18 }
 0x166   : > { %1537 = vmatprep.subr.bf16.mxu1 %v1635_v18  ;;  %1543 = vmatprep.subr.bf16.mxu0 %v1635_v18 }
 0x16b   : > { %1528 = vmatmul.mubr.msk.bf16.vlgmr.msra.gmra.mxu1 %vm792_vm3, %v782_v1  ;;  %1534 = vmatmul.mubr.msk.bf16.vlgmr.msra.gmra.mxu0 %vm792_vm3, %v783_v0 }
 0x16c   : > { %1539 = vmatprep.mubr.msk.bf16.mxu1 %vm1636_vm2, %v1635_v18  ;;  %1545 = vmatprep.mubr.msk.bf16.mxu0 %vm1636_vm2, %v1635_v18 }
 0x223   : > { %v834_v6 = vpop.f32.mrf.mxu1  ;;  %v880_v7 = vpop.f32.mrf.mxu0 }
 0x224   : > { %v978_v8 = vmul.f32 0.35355338, %v834_v6  ;;  %v979_v9 = vmul.f32 0.35355338, %v880_v7 }
 0x225   : > { %v1517_v10 = vpop.f32.mrf.mxu1  ;;  %v1523_v11 = vpop.f32.mrf.mxu0 }
 0x226   : > { %v985_v12 = vsel %vm792_vm3, %v979_v9, -inf  ;;  %v982_v13 = vsel %vm792_vm3, %v978_v8, -inf }
 0x227   : > { %986 = vmax.xlane.f32.xlu1 %v985_v12  ;;  %v883_v14 = vpop.f32.mrf.mxu0  ;;  %983 = vmax.xlane.f32.xlu0 %v982_v13  ;;  %v837_v15 = vpop.f32.mrf.mxu1 }
 0x229   : > { %v1518_v16 = vpop.f32.mrf.mxu1  ;;  %v1524_v17 = vpop.f32.mrf.mxu0 }
 0x22b   : > { %v926_v19 = vpop.f32.mrf.mxu1  ;;  %v972_v20 = vpop.f32.mrf.mxu0 }
 0x22c   : > { %v980_v21 = vmul.f32 0.35355338, %v926_v19  ;;  %v981_v24 = vmul.f32 0.35355338, %v972_v20 }
 0x22d   : > { %v1529_v22 = vpop.f32.mrf.mxu1  ;;  %v1535_v23 = vpop.f32.mrf.mxu0 }
 0x22e   : > { %v988_v25 = vsel %vm792_vm3, %v980_v21, -inf  ;;  %v991_v30 = vsel %vm792_vm3, %v981_v24, -inf }
 0x22f   : > { %v975_v26 = vpop.f32.mrf.mxu0  ;;  %989 = vmax.xlane.f32.xlu0 %v988_v25  ;;  %v929_v27 = vpop.f32.mrf.mxu1 }
 0x231   : > { %v1530_v28 = vpop.f32.mrf.mxu1  ;;  %v1536_v29 = vpop.f32.mrf.mxu0 }
 0x233   : > { %992 = vmax.xlane.f32.xlu0 %v991_v30  ;;  %v1608_v30 = vld [vmem:[%s1858_s5] sm:$0xff]  }
 0x238   : > { %557 = vperm.xlu1 %1581, %v1429_v31  }
 0x2b0   : > { %v987_v32 = vpop.xlane.xlu1 %986  ;;  %v984_v33 = vpop.xlane.xlu0 %983 }
 0x2b1   : > { %v995_v34 = vsub.f32 %v979_v9, %v987_v32  ;;  %v994_v35 = vsub.f32 %v978_v8, %v984_v33 }
 0x2b3   : > { %v1000_v36 = vmul.f32 1.442695, %v995_v34  ;;  %v998_v37 = vmul.f32 1.442695, %v994_v35 }
 0x2b4   : > { %v558_v59 = vpop.permute.xlu1 %557 }
 0x2b5   : > { %1610 = vpow2.f32 %v1000_v36  ;;  %v638_v15 = vadd.f32 %v1778_v3, %v558_v59 }
 0x2b6   : > { %1612 = vpow2.f32 %v998_v37 }
 0x2b7   : > { %v788_v22 = vpack.c.bf16 %v638_v15, %v638_v15 }
 0x2b8   : > { %v990_v38 = vpop.xlane.xlu0 %989 }
 0x2b9   : > { %v996_v39 = vsub.f32 %v980_v21, %v990_v38 }
 0x2bb   : > { %v1002_v40 = vmul.f32 1.442695, %v996_v39 }
 0x2bc   : > { %v993_v41 = vpop.xlane.xlu0 %992 }
 0x2bd   : > { %1614 = vpow2.f32 %v1002_v40  ;;  %v997_v42 = vsub.f32 %v981_v24, %v993_v41 }
 0x2bf   : > { %v1004_v43 = vmul.f32 1.442695, %v997_v42 }
 0x2c1   : > { %1616 = vpow2.f32 %v1004_v43 }
 0x2c2   : > { %v1611_v44 = vpop.eup %1610 }
 0x2c3   : > { %v1613_v45 = vpop.eup %1612  ;;  %v1009_v46 = vsel %vm792_vm3, %v1611_v44, 0.0 }
 0x2c4   : > { %v1006_v47 = vsel %vm792_vm3, %v1613_v45, 0.0  ;;  %1010 = vadd.xlane.f32.xlu0 %v1009_v46  ;;  %v1609_v46 = vld [vmem:[%s1858_s5 + $0x8] sm:$0xff]  }
 0x2c5   : > { %1007 = vadd.xlane.f32.xlu1 %v1006_v47 }
 0x2ca   : > { %v1615_v48 = vpop.eup %1614 }
 0x2cb   : > { %v1012_v49 = vsel %vm792_vm3, %v1615_v48, 0.0 }
 0x2cc   : > { %1013 = vadd.xlane.f32.xlu1 %v1012_v49 }
 0x2ce   : > { %v1617_v50 = vpop.eup %1616 }
 0x2cf   : > { %v1015_v51 = vsel %vm792_vm3, %v1617_v50, 0.0 }
 0x2d0   : > { %1016 = vadd.xlane.f32.xlu0 %v1015_v51 }
 0x2dd   : > { %567 = vperm.xlu1 %1581, %v1431_v52  }
 0x2e1   : > { %572 = vperm.xlu1 %1581, %v1432_v53  }
 0x2e5   : > { %1231 = vperm.xlu1 %1581, %v1221_v54  }
 0x2e6   : > { %562 = vperm.xlu0 %1580, %v1430_v55  }
 0x2e9   : > { %1241 = vperm.xlu1 %1581, %v1223_v56  }
 0x2ea   : > { %1226 = vperm.xlu0 %1580, %v1220_v57  }
 0x2ee   : > { %1236 = vperm.xlu0 %1580, %v1222_v58  }
 0x34d   : > { %v1011_v60 = vpop.xlane.xlu0 %1010 }
 0x34e   : > { %v1008_v61 = vpop.xlane.xlu1 %1007  ;;  %1618 = vrcp.f32 %v1011_v60 }
 0x34f   : > { %1620 = vrcp.f32 %v1008_v61 }
 0x355   : > { %v1014_v62 = vpop.xlane.xlu1 %1013 }
 0x356   : > { %1622 = vrcp.f32 %v1014_v62 }
 0x359   : > { %v1017_v63 = vpop.xlane.xlu0 %1016  ;;  %v568_v17 = vpop.permute.xlu1 %567 }
 0x35a   : > { %1624 = vrcp.f32 %v1017_v63 }
 0x35b   : > { %v1619_v0 = vpop.eup %1618 }
 0x35c   : > { %v1621_v1 = vpop.eup %1620  ;;  %v1023_v6 = vmul.f32 %v1619_v0, %v1611_v44 }
 0x35d   : > { %v1022_v7 = vmul.f32 %v1621_v1, %v1613_v45  ;;  %v573_v25 = vpop.permute.xlu1 %572 }
 0x35e   : > { %v1027_v8 = vpack.c.bf16 %v1023_v6, %v1023_v6  ;;  %v649_v27 = vadd.f32 %v1780_v4, %v573_v25 }
 0x35f   : > { %v1026_v9 = vpack.c.bf16 %v1022_v7, %v1022_v7 }
 0x360   : > { %v1080_v10 = vsel %vm792_vm3, %v1027_v8, 0  ;;  %v791_v29 = vpack.c.bf16 %v649_v27, %v649_v27 }
 0x361   : > { %v1034_v11 = vsel %vm792_vm3, %v1026_v9, 0  ;;  %1544 = vmatpush3.bf16.xpose.msra.mxu0 %v1080_v10  ;;  %v563_v12 = vpop.permute.xlu0 %562 }
 0x362   : > { %1538 = vmatpush3.bf16.xpose.msra.mxu1 %v1034_v11  ;;  %v641_v13 = vadd.f32 %v1782_v5, %v563_v12  ;;  %1555 = vmatprep.subr.bf16.mxu0 %v1635_v18  ;;  %v646_v5 = vadd.f32 %v1776_v2, %v568_v17 }
 0x363   : > { %v1623_v14 = vpop.eup %1622  ;;  %1549 = vmatprep.subr.bf16.mxu1 %v1635_v18 }
 0x364   : > { %v1024_v16 = vmul.f32 %v1623_v14, %v1615_v48  ;;  %v789_v19 = vpack.c.bf16 %v641_v13, %v641_v13  ;;  %v790_v28 = vpack.c.bf16 %v646_v5, %v646_v5  ;;  %v1232_v48 = vpop.permute.xlu1 %1231 }
 0x365   : > { %v1227_v47 = vpop.permute.xlu0 %1226 }
 0x366   : > { %v1028_v20 = vpack.c.bf16 %v1024_v16, %v1024_v16 }
 0x367   : > { %v1625_v21 = vpop.eup %1624 }
 0x368   : > { %1546 = vmatmul.mubr.msk.bf16.vlgmr.msra.gmra.mxu0 %vm792_vm3, %v789_v19  ;;  %v1126_v23 = vsel %vm792_vm3, %v1028_v20, 0  ;;  %v1025_v24 = vmul.f32 %v1625_v21, %v1617_v50  ;;  %v1242_v54 = vpop.permute.xlu1 %1241 }
 0x369   : > { %1540 = vmatmul.mubr.msk.bf16.vlgmr.msra.gmra.mxu1 %vm792_vm3, %v788_v22  ;;  %1557 = vmatprep.mubr.msk.bf16.mxu0 %vm1636_vm2, %v1635_v18  ;;  %v1237_v49 = vpop.permute.xlu0 %1236 }
 0x36a   : > { %1550 = vmatpush3.bf16.xpose.msra.mxu1 %v1126_v23  ;;  %v1029_v3 = vpack.c.bf16 %v1025_v24, %v1025_v24  ;;  %1551 = vmatprep.mubr.msk.bf16.mxu1 %vm1636_vm2, %v1635_v18 }
 0x36c   : > { %v1172_v26 = vsel %vm792_vm3, %v1029_v3, 0 }
 0x36d   : > { %1556 = vmatpush3.bf16.xpose.msra.mxu0 %v1172_v26 }
 0x371   : > { %1552 = vmatmul.mubr.msk.bf16.vlgmr.msra.gmra.mxu1 %vm792_vm3, %v790_v28 }
 0x372   : > { %1565 = vmatprep.mubr.msk.bf16.mxu1 %vm374_vm0, %v1608_v30 }
 0x374   : > { %1558 = vmatmul.mubr.msk.bf16.vlgmr.msra.gmra.mxu0 %vm792_vm3, %v791_v29 }
 0x428   : > { %v1116_v18 = vpop.f32.mrf.mxu0 }
 0x429   : > { %v1070_v2 = vpop.f32.mrf.mxu1 }
 0x42a   : > { %v1547_v31 = vpop.f32.mrf.mxu0  ;;  %v1214_v42 = vpack.c.bf16 %v1116_v18, %v1070_v2 }
 0x42b   : > { %v1541_v32 = vpop.f32.mrf.mxu1 }
 0x42c   : > { %v1119_v33 = vpop.f32.mrf.mxu0 }
 0x42d   : > { %v1073_v34 = vpop.f32.mrf.mxu1 }
 0x42e   : > { %v1548_v35 = vpop.f32.mrf.mxu0 }
 0x42f   : > { %v1542_v4 = vpop.f32.mrf.mxu1 }
 0x431   : > { %v1162_v36 = vpop.f32.mrf.mxu1 }
 0x433   : > { %v1553_v37 = vpop.f32.mrf.mxu1 }
 0x434   : > { %v1208_v38 = vpop.f32.mrf.mxu0 }
 0x435   : > { %v1165_v39 = vpop.f32.mrf.mxu1  ;;  %v1215_v40 = vpack.c.bf16 %v1208_v38, %v1162_v36 }
 0x436   : > { %v1559_v41 = vpop.f32.mrf.mxu0 }
 0x437   : > { %v1554_v43 = vpop.f32.mrf.mxu1  ;;  %1561 = vmatprep.subr.bf16.mxu1 %v1215_v40 }
 0x438   : > { %v1211_v44 = vpop.f32.mrf.mxu0  ;;  %1562 = vmatpush3.bf16.msra.mxu1 %v1215_v40 }
 0x439   : > { %1563 = vmatprep.subr.bf16.mxu1 %v1214_v42 }
 0x43a   : > { %v1560_v45 = vpop.f32.mrf.mxu0 }
 0x43c   : > { %1564 = vmatpush3.bf16.msra.mxu1 %v1214_v42 }
 0x43f   : > { %1566 = vmatmul.mubr.msk.bf16.vlgmr.msra.gmra.mxu1 %vm374_vm0, %v1609_v46 }
 0x4ff   : > { %v1567_v50 = vpop.f32.mrf.mxu1 }
 0x500   : > { %v1303_v51 = vadd.f32 %v1567_v50, %v1237_v49 }
 0x501   : > { %v1294_v52 = vpop.f32.mrf.mxu1 }
 0x502   : > { %1311 = vst.msk [vmem:[%s318_s22 + $0x10] sm:$0xff] %vm792_vm3, %v1303_v51  ;;  %v1295_v53 = vadd.f32 %v1294_v52, %v1227_v47 }
 0x503   : > { %v1568_v55 = vpop.f32.mrf.mxu1 }
 0x504   : > { %1309 = vst.msk [vmem:[%s318_s22] sm:$0xff] %vm792_vm3, %v1295_v53  ;;  %v1306_v56 = vadd.f32 %v1568_v55, %v1242_v54 }
 0x505   : > { %v1297_v57 = vpop.f32.mrf.mxu1 }
 0x506   : > { %1312 = vst.msk [vmem:[%s318_s22 + $0x18] sm:$0xff] %vm792_vm3, %v1306_v56  ;;  %v1298_v58 = vadd.f32 %v1297_v57, %v1232_v48 }
 0x508   : > { %1310 = vst.msk [vmem:[%s318_s22 + $0x8] sm:$0xff] %vm792_vm3, %v1298_v58 }
 0x509 PF: > { %s17_s24 = sadd.s32 1, %s1632_s24  }
 0x50a   : > { %p14_p4 = scmp.ge.s32.totalorder %s17_s24, 4  }
 0x50c   :  { %16 = sbr.rel (!%p14_p4) target bundleno = 1 (0x1), region = 88 }

</bundles_post_ra>
